<compile_context>
chip_gen: v5e
topology: v5e:2x2
jax: 0.10.0
libtpu: 0.0.40
codegen_flags: <defaults>
</compile_context>

<pallas_src>
import jax
import jax.numpy as jnp
from jax.experimental import pallas as pl
from jax.experimental.pallas import tpu as pltpu


def _trelu_kernel(bias_ref, x_ref, o_ref):
    # bias_ref: (1, C_blk, 1)   per-channel threshold (broadcasts over N and lanes)
    # x_ref/o_ref: (N, C_blk, T_hw)
    x = x_ref[...]
    bias = bias_ref[...]
    zero = jnp.zeros((), dtype=x.dtype)
    # out = x if x > bias else 0   (== relu(x-bias) + bias*sign(relu(x-bias)))
    o_ref[...] = jnp.where(x > bias, x, zero)


def _choose_tiles(N, C, HW, itemsize, target_bytes=2 * 1024 * 1024):
    """Pick (c_blk, t_hw) satisfying the TPU (8, 128) block rules and ~target_bytes tiles."""
    # --- lane (spatial) chunk: multiple of 128 dividing HW, else full HW ---
    if HW % 128 == 0 and HW >= 128:
        lane_cap = max(128, min(8192, (target_bytes // max(1, N * itemsize)) // 128 * 128))
        t_hw = 128
        cand = 128
        while cand <= min(HW, lane_cap):
            if HW % cand == 0:
                t_hw = cand
            cand += 128
    else:
        t_hw = HW  # full extent is always a legal block size

    # --- channel block: must be a multiple of 8 dividing C, or equal to C ---
    per_chan_bytes = max(1, N * t_hw * itemsize)
    want = max(1, target_bytes // per_chan_bytes)
    if C <= want or C < 8:
        c_blk = C
    else:
        best = None
        cand = 8
        while cand <= min(C, want):
            if C % cand == 0:
                best = cand
            cand += 8
        c_blk = best if best is not None else C
    return c_blk, t_hw


def trelu(x, filters, alpha=8.0 / 255):
    """x: (N, C, H, W), filters: (C, C_in, kH, kW). Returns (N, C, H, W)."""
    N, C, H, W = x.shape
    assert filters.shape[0] == C, "filters' output-channel dim must match x's channel dim"
    HW = H * W

    # Per-channel threshold, computed once outside the kernel (tiny reduction).
    bias = alpha * jnp.sum(jnp.abs(filters), axis=(1, 2, 3))      # (C,), filters dtype
    bias3 = bias.reshape(1, C, 1)

    # Lane-dense view of x: channel = sublane-ish blocked dim, H*W = lane dim.
    x3 = x.reshape(N, C, HW)                                      # contiguous, free

    c_blk, t_hw = _choose_tiles(N, C, HW, jnp.dtype(x.dtype).itemsize)
    grid = (C // c_blk, HW // t_hw)

    out3 = pl.pallas_call(
        _trelu_kernel,
        out_shape=jax.ShapeDtypeStruct((N, C, HW), x.dtype),
        grid=grid,
        in_specs=[
            pl.BlockSpec((1, c_blk, 1), lambda cb, hb: (0, cb, 0)),
            pl.BlockSpec((N, c_blk, t_hw), lambda cb, hb: (0, cb, hb)),
        ],
        out_specs=pl.BlockSpec((N, c_blk, t_hw), lambda cb, hb: (0, cb, hb)),
        compiler_params=pltpu.CompilerParams(
            dimension_semantics=("parallel", "parallel"),
        ),
    )(bias3, x3)

    return out3.reshape(N, C, H, W)


def _trelu_ref(x, filters, alpha=8.0 / 255):
    bias = alpha * jnp.sum(jnp.abs(filters), axis=(1, 2, 3))[None, :, None, None]
    r = jax.nn.relu(x - bias)
    return r + bias * jnp.sign(r)


if __name__ == "__main__":
    key = jax.random.PRNGKey(0)
    kx, kf = jax.random.split(key)

    # small shapes consistent with the module's NCHW conv-activation usage
    N, C, H, W = 2, 4, 16, 16
    C_in, kH, kW = 3, 3, 3

    x = jax.random.normal(kx, (N, C, H, W), dtype=jnp.float32)
    filters = 0.1 * jax.random.normal(kf, (C, C_in, kH, kW), dtype=jnp.float32)

    out = trelu(x, filters)
    out = jax.block_until_ready(out)

    ref = _trelu_ref(x, filters)
    assert out.shape == (N, C, H, W)
    assert jnp.allclose(out, ref, atol=1e-5, rtol=1e-5), "mismatch vs reference"

    print("KERNEL_OK")
</pallas_src>

<mosaic_0001>
module attributes {stable_mosaic.version = 11 : i64} {
  func.func @_trelu_kernel(%arg0: i32, %arg1: i32, %arg2: memref<1x4x1xf32, #tpu.memory_space<vmem>>, %arg3: memref<2x4x256xf32, #tpu.memory_space<vmem>>, %arg4: memref<2x4x256xf32, #tpu.memory_space<vmem>>) attributes {dimension_semantics = [#tpu.dimension_semantics<parallel>, #tpu.dimension_semantics<parallel>], iteration_bounds = array<i64: 1, 1>, scalar_prefetch = 0 : i64, scratch_operands = 0 : i64, tpu.core_type = #tpu.core_type<tc>, window_params = [{transform_indices = @transform_0, window_bounds = array<i64: 1, 4, 1>}, {transform_indices = @transform_1, window_bounds = array<i64: 2, 4, 256>}, {transform_indices = @transform_2, window_bounds = array<i64: 2, 4, 256>}]} {
    %c0 = arith.constant 0 : index
    %c0_0 = arith.constant 0 : index
    %c0_1 = arith.constant 0 : index
    %0 = vector.load %arg3[%c0, %c0_0, %c0_1] : memref<2x4x256xf32, #tpu.memory_space<vmem>>, vector<2x4x256xf32>
    %c0_2 = arith.constant 0 : index
    %c0_3 = arith.constant 0 : index
    %c0_4 = arith.constant 0 : index
    %1 = vector.load %arg2[%c0_2, %c0_3, %c0_4] : memref<1x4x1xf32, #tpu.memory_space<vmem>>, vector<1x4x1xf32>
    %2 = vector.broadcast %1 : vector<1x4x1xf32> to vector<2x4x256xf32>
    %3 = arith.cmpf ogt, %0, %2 : vector<2x4x256xf32>
    %cst = arith.constant 0.000000e+00 : f32
    %4 = vector.broadcast %cst : f32 to vector<2x4x256xf32>
    %5 = arith.select %3, %0, %4 : vector<2x4x256xi1>, vector<2x4x256xf32>
    %c0_5 = arith.constant 0 : index
    %c0_6 = arith.constant 0 : index
    %c0_7 = arith.constant 0 : index
    %6 = vector.load %arg4[%c0_5, %c0_6, %c0_7] : memref<2x4x256xf32, #tpu.memory_space<vmem>>, vector<2x4x256xf32>
    tpu.vector_store %arg4[%c0_5, %c0_6, %c0_7], %5 {strides = array<i32>} : memref<2x4x256xf32, #tpu.memory_space<vmem>>, vector<2x4x256xf32>,
    return
  }
  func.func @transform_0(%arg0: i32, %arg1: i32) -> (i32, i32, i32) {
    %c0_i32 = arith.constant 0 : i32
    %c0_i32_0 = arith.constant 0 : i32
    %c0_i32_1 = arith.constant 0 : i32
    return %c0_i32, %arg0, %c0_i32_0 : i32, i32, i32
  }
  func.func @transform_1(%arg0: i32, %arg1: i32) -> (i32, i32, i32) {
    %c0_i32 = arith.constant 0 : i32
    %c0_i32_0 = arith.constant 0 : i32
    return %c0_i32, %arg0, %arg1 : i32, i32, i32
  }
  func.func @transform_2(%arg0: i32, %arg1: i32) -> (i32, i32, i32) {
    %c0_i32 = arith.constant 0 : i32
    %c0_i32_0 = arith.constant 0 : i32
    return %c0_i32, %arg0, %arg1 : i32, i32, i32
  }
}

</mosaic_0001>

<bundles_post_ra>
// kernel: tpu_custom_call.1
= control target key start
LH: loop header
LB: loop body
LE: loop exit
PB: predicated region body
PF: predicated region fallthrough
CT: control target
= control target key end

     0   :  { %7 = vsyncpa [#allocation3], 0  ;;  %s160_s0 = inlined_call_operand.vmem [shape: f32[1,4,1], index: 0, kind: input, shape index: {}]   ;;  %s161_s1 = inlined_call_operand.hbm [shape: f32[2,4,256], index: 1, kind: input, shape index: {}]   ;;  %s162_s2 = inlined_call_operand.hbm [shape: f32[2,4,256], index: 2, kind: output, shape index: {}]  }
   0x1   :  { %8 = vsyncpa [#allocation4], 0  ;;  %s15_s11 = sshll.u32 %s161_s1, 4  ;;  %s124_s12 = smov [#allocation2]   ;;  %s16_s11 = int_to_ptr.hbm [resolvable:$true] %s15_s11 }
   0x2   :  { %s17_s13 = sshll.u32 %s124_s12, 4  ;;  %s125_s14 = smov 128   ;;  %s18_s13 = int_to_ptr.vmem [resolvable:$true] %s17_s13 }
   0x3   :  { %s126_s15 = smov 8  }
   0x4   :  { %23 = dma.hbm_to_vmem [thread:$0]  %s16_s11, 256, %s18_s13, [#allocation3], %s125_s14, %s125_s14, %s126_s15  }
   0x5   :  { %120 = dma.done.wait [#allocation3], 256  }
   0x6   :  { %121 = vsyncadd [#allocation3], 4294967040  ;;  %v127_v0 = vmov 0   ;;  %v30_v1 = vld [vmem:[%s160_s0] sm:$0xf]  ;;  %v29_v7 = vld [vmem:[#allocation2 + $0x8] sm:$0xff] }
   0x7   :  { %71 = vset.pattern.permute.xlu0 %v127_v0  ;;  %v128_v2 = vmov 839922192   ;;  %v28_v6 = vld [vmem:[#allocation2] sm:$0xff]  ;;  %s129_s1 = smov [#allocation5]   ;;  %s52_s21 = sshll.u32 %s162_s2, 4  ;;  %s53_s21 = int_to_ptr.hbm [resolvable:$true] %s52_s21 }
   0x8   :  { %33 = vperm.xlu0 %71, %v30_v1   ;;  %v36_v3 = vunpack.c.l.s4 %v128_v2  ;;  %s50_s18 = sshll.u32 %s129_s1, 4  ;;  %s51_s18 = int_to_ptr.vmem [resolvable:$true] %s50_s18 }
   0xa   :  { %v37_v4 = vunpack.c.0.s8 %v36_v3 }
  0x7a   :  { %v34_v5 = vpop.permute.xlu0 %33 }
  0x7b   :  { %v38_v8 = vperm.slane %v34_v5, %v37_v4 }
  0x7d   :  { %vm40_vm0 = vcmp.gt.f32.partialorder %v28_v6, %v38_v8  ;;  %vm41_vm1 = vcmp.gt.f32.partialorder %v29_v7, %v38_v8 }
  0x7e   :  { %v42_v9 = vsel %vm40_vm0, %v28_v6, 0.0  ;;  %v43_v10 = vsel %vm41_vm1, %v29_v7, 0.0 }
  0x7f   :  { %44 = vst [vmem:[#allocation5] sm:$0xff] %v42_v9 }
  0x80   :  { %45 = vst [vmem:[#allocation5 + $0x8] sm:$0xff] %v43_v10 }
  0x81   :  { %58 = dma.vmem_to_hbm [thread:$0]  %s51_s18, 256, %s53_s21, [#allocation4], %s125_s14, %s125_s14, %s126_s15  }
  0x82   :  { %122 = dma.done.wait [#allocation4], 256  }
  0x83   :  { %123 = vsyncadd [#allocation4], 4294967040 }
  0x84   :  { %63 = vsyncpa [#allocation3], 1 }
  0x85   :  { %64 = vsyncpa [#allocation4], 1 }

</bundles_post_ra>
